<compile_context>
chip_gen: v7x
topology: tpu7x:2x2x1
jax: 0.10.0
libtpu: 0.0.40
codegen_flags: <defaults>
</compile_context>

<pallas_src>
import functools
import math

import jax
import jax.numpy as jnp
from jax.experimental import pallas as pl
from jax.experimental.pallas import tpu as pltpu


def _same_pad_conv_kernel(xl_ref, xm_ref, xr_ref, w_ref, b_ref, o_ref, *,
                          kernel_size, dilation, pad, tile_t, halo_block, seq_len,
                          compute_dtype):
    """One (batch, time-tile) grid step.

    xl_ref: (1, C_in, H)       left halo  (garbage where global index < 0)
    xm_ref: (1, C_in, TILE_T)  main tile  (garbage where global index >= T)
    xr_ref: (1, C_in, H)       right halo (garbage where global index >= T)
    w_ref : (K, C_out, C_in)   weights (compute dtype)
    b_ref : (C_out, 1)         bias, f32
    o_ref : (1, C_out, TILE_T) output tile (lane-dense; OOB tail dropped by Pallas)
    """
    j = pl.program_id(1)

    # Assemble the window (all segment widths are multiples of 128 -> cheap copies).
    win = jnp.concatenate([xl_ref[0], xm_ref[0], xr_ref[0]], axis=-1)  # (C_in, W)
    win = win.astype(compute_dtype)
    win_w = tile_t + 2 * halo_block

    # In-kernel conv zero-padding: window column c holds global time index
    # g = j*TILE_T - H + c; anything outside [0, T) must read as zero (this also
    # scrubs Pallas's undefined edge-block padding).
    col = jax.lax.broadcasted_iota(jnp.int32, (1, win_w), 1) + (j * tile_t - halo_block)
    valid = (col >= 0) & (col < seq_len)
    win = jnp.where(valid, win, 0)

    # K accumulating matmuls on the MXU, f32 accumulation.
    acc = None
    for k in range(kernel_size):
        off = halo_block - pad + k * dilation          # >= 0 and off+TILE_T <= W
        xk = win[:, off: off + tile_t]                 # (C_in, TILE_T)
        pk = jnp.dot(w_ref[k], xk, preferred_element_type=jnp.float32)
        acc = pk if acc is None else acc + pk
    acc = acc + b_ref[...]                             # bias in f32 epilogue
    o_ref[0] = acc.astype(o_ref.dtype)


def same_pad_conv(x_ncw, weight_oik, bias, *, kernel_size, dilation=1, groups=1,
                  compute_dtype=jnp.bfloat16, out_dtype=None, tile_t_base=2048,
                  vmem_limit_bytes=48 * 1024 * 1024):
    """x_ncw: (B, C_in, T); weight_oik: (C_out, C_in//groups, K); bias: (C_out,)."""
    if groups != 1:
        # TODO(synk): grouped / depthwise conv (groups > 1) not implemented in the kernel.
        raise NotImplementedError("groups > 1 not supported")

    B, C_in, T = x_ncw.shape
    C_out = weight_oik.shape[0]
    K = kernel_size
    rf = (K - 1) * dilation + 1
    pad = rf // 2
    halo = rf - 1                                      # extra input cols needed past a tile

    # Halo block width (lane-aligned, >= halo >= pad) and time tile (multiple of H).
    H = ((max(halo, 1) + 127) // 128) * 128
    TILE_T = H * max(1, (tile_t_base + H - 1) // H)
    stride_h = TILE_T // H

    n_tiles = pl.cdiv(T, TILE_T)
    last_h = pl.cdiv(T, H) - 1                         # last at-least-partially-valid H block
    out_dtype = x_ncw.dtype if out_dtype is None else out_dtype

    # Tiny parameter tensors: cast in the wrapper.
    w_kio = jnp.transpose(weight_oik, (2, 0, 1)).astype(compute_dtype)   # (K, C_out, C_in)
    b_col = bias.reshape(C_out, 1).astype(jnp.float32)

    kernel = functools.partial(
        _same_pad_conv_kernel, kernel_size=K, dilation=dilation, pad=pad,
        tile_t=TILE_T, halo_block=H, seq_len=T, compute_dtype=compute_dtype)

    return pl.pallas_call(
        kernel,
        out_shape=jax.ShapeDtypeStruct((B, C_out, T), out_dtype),
        grid=(B, n_tiles),
        in_specs=[
            # left halo: [j*TILE_T - H, j*TILE_T); clamped to block 0 for j == 0
            # (its nominal range is all < 0 there and gets masked in-kernel).
            pl.BlockSpec((1, C_in, H),
                         lambda b, j: (b, 0, jnp.maximum(j * stride_h - 1, 0))),
            # main tile: [j*TILE_T, (j+1)*TILE_T)
            pl.BlockSpec((1, C_in, TILE_T), lambda b, j: (b, 0, j)),
            # right halo: [(j+1)*TILE_T, (j+1)*TILE_T + H); clamped for the last tile
            # (its nominal range is all >= T there and gets masked in-kernel).
            pl.BlockSpec((1, C_in, H),
                         lambda b, j: (b, 0, jnp.minimum((j + 1) * stride_h, last_h))),
            # resident weights and bias
            pl.BlockSpec((K, C_out, C_in), lambda b, j: (0, 0, 0)),
            pl.BlockSpec((C_out, 1), lambda b, j: (0, 0)),
        ],
        out_specs=pl.BlockSpec((1, C_out, TILE_T), lambda b, j: (b, 0, j)),
        compiler_params=pltpu.CompilerParams(
            dimension_semantics=("parallel", "parallel"),
            vmem_limit_bytes=vmem_limit_bytes,
        ),
    )(x_ncw, x_ncw, x_ncw, w_kio, b_col)


def init_same_pad_conv_params(key, in_channels, out_channels, kernel_size, groups=1):
    """Deterministic init matching nn.Conv1d defaults (kaiming uniform, a=sqrt(5))."""
    k_w, k_b = jax.random.split(key)
    fan_in = (in_channels // groups) * kernel_size
    bound = 1.0 / math.sqrt(fan_in)
    weight = jax.random.uniform(k_w, (out_channels, in_channels // groups, kernel_size),
                                jnp.float32, minval=-bound, maxval=bound)
    bias = jax.random.uniform(k_b, (out_channels,), jnp.float32,
                              minval=-bound, maxval=bound)
    return weight, bias


def _reference_same_pad_conv(x_ncw, weight, bias, *, kernel_size, dilation):
    """Pure-JAX reference (lax conv) reproducing the PyTorch module."""
    rf = (kernel_size - 1) * dilation + 1
    pad = rf // 2
    out = jax.lax.conv_general_dilated(
        x_ncw, weight, window_strides=(1,), padding=[(pad, pad)],
        rhs_dilation=(dilation,), dimension_numbers=("NCH", "OIH", "NCH"),
        precision=jax.lax.Precision.HIGHEST)
    out = out + bias[None, :, None]
    if rf % 2 == 0:
        out = out[:, :, :-1]
    return out


def _check(key, B, C_in, C_out, T, kernel_size, dilation, tile_t_base=2048):
    k_x, k_p = jax.random.split(key)
    x = jax.random.normal(k_x, (B, C_in, T), jnp.float32)
    weight, bias = init_same_pad_conv_params(k_p, C_in, C_out, kernel_size)

    out = same_pad_conv(x, weight, bias, kernel_size=kernel_size, dilation=dilation,
                        tile_t_base=tile_t_base)
    out = jax.block_until_ready(out)

    # Reference on the same bf16-rounded inputs (kernel accumulates in f32).
    x_q = x.astype(jnp.bfloat16).astype(jnp.float32)
    w_q = weight.astype(jnp.bfloat16).astype(jnp.float32)
    ref = _reference_same_pad_conv(x_q, w_q, bias,
                                   kernel_size=kernel_size, dilation=dilation)

    assert out.shape == (B, C_out, T), out.shape
    err = float(jnp.max(jnp.abs(out - ref)))
    assert jnp.allclose(out, ref, atol=2e-3, rtol=2e-3), f"mismatch vs reference conv: {err}"
    return out


if __name__ == "__main__":
    key = jax.random.PRNGKey(0)
    k0, k1, k2, k3 = jax.random.split(key, 4)

    # Small shapes consistent with the module; vary tiling to exercise the
    # in-kernel left-pad / right-tail masking and halo clamping paths.
    _check(k0, B=2, C_in=4, C_out=8, T=16, kernel_size=3, dilation=2)                    # odd rf, single tile
    _check(k1, B=2, C_in=4, C_out=8, T=300, kernel_size=3, dilation=4, tile_t_base=128)  # multi-tile + halos + partial tail
    _check(k2, B=2, C_in=4, C_out=8, T=16, kernel_size=2, dilation=1)                    # even rf -> drop-last behavior
    _check(k3, B=2, C_in=4, C_out=8, T=300, kernel_size=3, dilation=96, tile_t_base=256) # large dilation (H=256, big pad)

    print("KERNEL_OK")
</pallas_src>

<mosaic_0001>
module attributes {stable_mosaic.version = 11 : i64} {
  func.func @_same_pad_conv_kernel(%arg0: i32, %arg1: i32, %arg2: memref<1x4x128xf32, #tpu.memory_space<vmem>>, %arg3: memref<1x4x2048xf32, #tpu.memory_space<vmem>>, %arg4: memref<1x4x128xf32, #tpu.memory_space<vmem>>, %arg5: memref<3x8x4xbf16, #tpu.memory_space<vmem>>, %arg6: memref<8x1xf32, #tpu.memory_space<vmem>>, %arg7: memref<1x8x2048xf32, #tpu.memory_space<vmem>>) attributes {dimension_semantics = [#tpu.dimension_semantics<parallel>, #tpu.dimension_semantics<parallel>], iteration_bounds = array<i64: 2, 1>, scalar_prefetch = 0 : i64, scratch_operands = 0 : i64, tpu.core_type = #tpu.core_type<tc>, window_params = [{transform_indices = @transform_0, window_bounds = array<i64: 1, 4, 128>}, {transform_indices = @transform_1, window_bounds = array<i64: 1, 4, 2048>}, {transform_indices = @transform_2, window_bounds = array<i64: 1, 4, 128>}, {pipeline_mode = #tpu.pipeline_mode<synchronous>, transform_indices = @transform_3, window_bounds = array<i64: 3, 8, 4>}, {pipeline_mode = #tpu.pipeline_mode<synchronous>, transform_indices = @transform_4, window_bounds = array<i64: 8, 1>}, {transform_indices = @transform_5, window_bounds = array<i64: 1, 8, 2048>}]} {
    %c0 = arith.constant 0 : index
    %c0_0 = arith.constant 0 : index
    %c0_1 = arith.constant 0 : index
    %0 = vector.load %arg2[%c0, %c0_0, %c0_1] : memref<1x4x128xf32, #tpu.memory_space<vmem>>, vector<1x4x128xf32>
    %1 = vector.shape_cast %0 : vector<1x4x128xf32> to vector<4x128xf32>
    %c0_2 = arith.constant 0 : index
    %c0_3 = arith.constant 0 : index
    %c0_4 = arith.constant 0 : index
    %2 = vector.load %arg3[%c0_2, %c0_3, %c0_4] : memref<1x4x2048xf32, #tpu.memory_space<vmem>>, vector<1x4x2048xf32>
    %3 = vector.shape_cast %2 : vector<1x4x2048xf32> to vector<4x2048xf32>
    %c0_5 = arith.constant 0 : index
    %c0_6 = arith.constant 0 : index
    %c0_7 = arith.constant 0 : index
    %4 = vector.load %arg4[%c0_5, %c0_6, %c0_7] : memref<1x4x128xf32, #tpu.memory_space<vmem>>, vector<1x4x128xf32>
    %5 = vector.shape_cast %4 : vector<1x4x128xf32> to vector<4x128xf32>
    %6 = tpu.concatenate %1, %3, %5 in 1 : vector<4x128xf32>, vector<4x2048xf32>, vector<4x128xf32> -> vector<4x2304xf32>
    %7 = arith.truncf %6 : vector<4x2304xf32> to vector<4x2304xbf16>
    %8 = tpu.iota {dimensions = array<i32: 1>} : vector<1x2304xi32>
    %c2048_i32 = arith.constant 2048 : i32
    %9 = arith.muli %arg1, %c2048_i32 : i32
    %c128_i32 = arith.constant 128 : i32
    %10 = arith.subi %9, %c128_i32 : i32
    %11 = vector.broadcast %10 : i32 to vector<1x2304xi32>
    %12 = arith.addi %8, %11 : vector<1x2304xi32>
    %c0_i32 = arith.constant 0 : i32
    %13 = vector.broadcast %c0_i32 : i32 to vector<1x2304xi32>
    %14 = arith.cmpi sge, %12, %13 : vector<1x2304xi32>
    %c16_i32 = arith.constant 16 : i32
    %15 = vector.broadcast %c16_i32 : i32 to vector<1x2304xi32>
    %16 = arith.cmpi slt, %12, %15 : vector<1x2304xi32>
    %17 = arith.andi %14, %16 : vector<1x2304xi1>
    %c0_i32_8 = arith.constant 0 : i32
    %18 = arith.sitofp %c0_i32_8 : i32 to bf16
    %19 = vector.shape_cast %17 : vector<1x2304xi1> to vector<1x2304xi1>
    %20 = vector.broadcast %19 : vector<1x2304xi1> to vector<4x2304xi1>
    %21 = vector.broadcast %18 : bf16 to vector<4x2304xbf16>
    %22 = arith.select %20, %7, %21 : vector<4x2304xi1>, vector<4x2304xbf16>
    %23 = vector.extract_strided_slice %22 {offsets = [0, 126], sizes = [4, 2048], strides = [1, 1]} : vector<4x2304xbf16> to vector<4x2048xbf16>
    %c0_9 = arith.constant 0 : index
    %c0_10 = arith.constant 0 : index
    %c0_11 = arith.constant 0 : index
    %24 = vector.load %arg5[%c0_9, %c0_10, %c0_11] : memref<3x8x4xbf16, #tpu.memory_space<vmem>>, vector<1x8x4xbf16>
    %25 = vector.shape_cast %24 : vector<1x8x4xbf16> to vector<8x4xbf16>
    %cst = arith.constant dense<0.000000e+00> : vector<8x2048xf32>
    %26 = tpu.matmul %25, %23, %cst {dimension_numbers = #tpu.dot_dimension_numbers<[1], [0], [0], [1], [0, 0, 1, 1], [], []>} : vector<8x4xbf16>, vector<4x2048xbf16>, vector<8x2048xf32> -> vector<8x2048xf32>
    %27 = vector.extract_strided_slice %22 {offsets = [0, 128], sizes = [4, 2048], strides = [1, 1]} : vector<4x2304xbf16> to vector<4x2048xbf16>
    %c1 = arith.constant 1 : index
    %c0_12 = arith.constant 0 : index
    %c0_13 = arith.constant 0 : index
    %28 = vector.load %arg5[%c1, %c0_12, %c0_13] : memref<3x8x4xbf16, #tpu.memory_space<vmem>>, vector<1x8x4xbf16>
    %29 = vector.shape_cast %28 : vector<1x8x4xbf16> to vector<8x4xbf16>
    %cst_14 = arith.constant dense<0.000000e+00> : vector<8x2048xf32>
    %30 = tpu.matmul %29, %27, %cst_14 {dimension_numbers = #tpu.dot_dimension_numbers<[1], [0], [0], [1], [0, 0, 1, 1], [], []>} : vector<8x4xbf16>, vector<4x2048xbf16>, vector<8x2048xf32> -> vector<8x2048xf32>
    %31 = arith.addf %26, %30 : vector<8x2048xf32>
    %32 = vector.extract_strided_slice %22 {offsets = [0, 130], sizes = [4, 2048], strides = [1, 1]} : vector<4x2304xbf16> to vector<4x2048xbf16>
    %c2 = arith.constant 2 : index
    %c0_15 = arith.constant 0 : index
    %c0_16 = arith.constant 0 : index
    %33 = vector.load %arg5[%c2, %c0_15, %c0_16] : memref<3x8x4xbf16, #tpu.memory_space<vmem>>, vector<1x8x4xbf16>
    %34 = vector.shape_cast %33 : vector<1x8x4xbf16> to vector<8x4xbf16>
    %cst_17 = arith.constant dense<0.000000e+00> : vector<8x2048xf32>
    %35 = tpu.matmul %34, %32, %cst_17 {dimension_numbers = #tpu.dot_dimension_numbers<[1], [0], [0], [1], [0, 0, 1, 1], [], []>} : vector<8x4xbf16>, vector<4x2048xbf16>, vector<8x2048xf32> -> vector<8x2048xf32>
    %36 = arith.addf %31, %35 : vector<8x2048xf32>
    %c0_18 = arith.constant 0 : index
    %c0_19 = arith.constant 0 : index
    %37 = vector.load %arg6[%c0_18, %c0_19] : memref<8x1xf32, #tpu.memory_space<vmem>>, vector<8x1xf32>
    %38 = vector.broadcast %37 : vector<8x1xf32> to vector<8x2048xf32>
    %39 = arith.addf %36, %38 : vector<8x2048xf32>
    %c0_20 = arith.constant 0 : index
    %c0_21 = arith.constant 0 : index
    %c0_22 = arith.constant 0 : index
    %40 = vector.load %arg7[%c0_20, %c0_21, %c0_22] : memref<1x8x2048xf32, #tpu.memory_space<vmem>>, vector<1x8x2048xf32>
    %41 = vector.shape_cast %40 : vector<1x8x2048xf32> to vector<8x2048xf32>
    %42 = vector.shape_cast %39 : vector<8x2048xf32> to vector<1x8x2048xf32>
    tpu.vector_store %arg7[%c0_20, %c0_21, %c0_22], %42 {strides = array<i32>} : memref<1x8x2048xf32, #tpu.memory_space<vmem>>, vector<1x8x2048xf32>,
    return
  }
  func.func @transform_0(%arg0: i32, %arg1: i32) -> (i32, i32, i32) {
    %c16_i32 = arith.constant 16 : i32
    %0 = arith.muli %arg1, %c16_i32 : i32
    %c1_i32 = arith.constant 1 : i32
    %1 = arith.subi %0, %c1_i32 : i32
    %c0_i32 = arith.constant 0 : i32
    %2 = arith.maxsi %1, %c0_i32 : i32
    %c0_i32_0 = arith.constant 0 : i32
    %c0_i32_1 = arith.constant 0 : i32
    return %arg0, %c0_i32_0, %2 : i32, i32, i32
  }
  func.func @transform_1(%arg0: i32, %arg1: i32) -> (i32, i32, i32) {
    %c0_i32 = arith.constant 0 : i32
    %c0_i32_0 = arith.constant 0 : i32
    return %arg0, %c0_i32, %arg1 : i32, i32, i32
  }
  func.func @transform_2(%arg0: i32, %arg1: i32) -> (i32, i32, i32) {
    %c1_i32 = arith.constant 1 : i32
    %0 = arith.addi %arg1, %c1_i32 : i32
    %c16_i32 = arith.constant 16 : i32
    %1 = arith.muli %0, %c16_i32 : i32
    %c0_i32 = arith.constant 0 : i32
    %2 = arith.minsi %1, %c0_i32 : i32
    %c0_i32_0 = arith.constant 0 : i32
    %c0_i32_1 = arith.constant 0 : i32
    return %arg0, %c0_i32_0, %2 : i32, i32, i32
  }
  func.func @transform_3(%arg0: i32, %arg1: i32) -> (i32, i32, i32) {
    %c0_i32 = arith.constant 0 : i32
    %c0_i32_0 = arith.constant 0 : i32
    %c0_i32_1 = arith.constant 0 : i32
    %c0_i32_2 = arith.constant 0 : i32
    return %c0_i32, %c0_i32_0, %c0_i32_1 : i32, i32, i32
  }
  func.func @transform_4(%arg0: i32, %arg1: i32) -> (i32, i32) {
    %c0_i32 = arith.constant 0 : i32
    %c0_i32_0 = arith.constant 0 : i32
    %c0_i32_1 = arith.constant 0 : i32
    return %c0_i32, %c0_i32_0 : i32, i32
  }
  func.func @transform_5(%arg0: i32, %arg1: i32) -> (i32, i32, i32) {
    %c0_i32 = arith.constant 0 : i32
    %c0_i32_0 = arith.constant 0 : i32
    return %arg0, %c0_i32, %arg1 : i32, i32, i32
  }
}

</mosaic_0001>

<bundles_post_ra>
// kernel: tpu_custom_call.1
= control target key start
LH: loop header
LB: loop body
LE: loop exit
PB: predicated region body
PF: predicated region fallthrough
CT: control target
= control target key end

     0   :  { %10 = vsyncpa [#allocation3], 0  ;;  %s2821_s0 = inlined_call_operand.vmem [shape: f32[2,4,16], index: 0, kind: input, shape index: {}]   ;;  %s2822_s1 = inlined_call_operand.vmem [shape: f32[2,4,16], index: 1, kind: input, shape index: {}]   ;;  %s2823_s2 = inlined_call_operand.vmem [shape: f32[2,4,16], index: 2, kind: input, shape index: {}]   ;;  %s2824_s3 = inlined_call_operand.vmem [shape: bf16[3,8,4], index: 3, kind: input, shape index: {}]   ;;  %s2825_s4 = inlined_call_operand.vmem [shape: f32[8,1], index: 4, kind: input, shape index: {}]   ;;  %s2826_s5 = inlined_call_operand.hbm [shape: f32[2,8,16], index: 5, kind: output, shape index: {}]  }
   0x1   :  { %12 = vsyncpa [#allocation3 + $0x1], 0  ;;  %s2367_s18 = smov 0   ;;  %s2369_s19 = smov 0  }
   0x2   :  { %s2371_s20 = smov 0   ;;  %s2373_s21 = smov 0  }
   0x3   :  { %s2375_s22 = smov 0   ;;  %s2377_s23 = smov 0  }
   0x4 LB: > { %s2126_s24 = sadd.s32 4294967295, %s2330_s23   ;;  %s2127_s25 = sadd.s32 4294967294, %s2330_s23   ;;  %s2330_s23 = sphi %s2377_s23, %s18_s23   ;;  %s2326_s22 = sphi %s2375_s22, %s2833_s22   ;;  %s2322_s21 = sphi %s2373_s21, %s2832_s21   ;;  %s2318_s20 = sphi %s2371_s20, %s2831_s20   ;;  %s2314_s19 = sphi %s2369_s19, %s2830_s19   ;;  %s2310_s18 = sphi %s2367_s18, %s2829_s18  }
   0x5   : > { %s30_s26 = sadd.s32 1, %s2326_s22  ;;  %s181_s27 = sadd.s32 1, %s2318_s20 }
   0x6   : > { %p32_p0 = scmp.ge.s32.totalorder %s30_s26, 2  ;;  %p191_p1 = scmp.ne.s32.totalorder %s2318_s20, %s2314_s19 }
   0x7   : > { %p192_p2 = scmp.eq.s32.totalorder %s2126_s24, 1  ;;  %p197_p3 = scmp.ne.s32.totalorder %s2314_s19, %s2310_s18 }
   0x8   : > { %s2835_s26 = smov (%p32_p0, %s30_s26), 0  ;;  %p198_p5 = scmp.eq.s32.totalorder %s2127_s25, 1 }
   0x9   : > { %p2407_p4 = por %p192_p2, %p191_p1  ;;  %s176_s29 = ssub.s32 %s2326_s22, %s2835_s26 }
   0xa   : > { %p2130_p6 = scmp.ge.s32.totalorder %s2330_s23, 1  ;;  %p179_p7 = scmp.eq.s32.totalorder %s176_s29, 0 }
   0xb   : > { %p2414_p8 = por %p198_p5, %p197_p3  ;;  %p274_p9 = scmp.lt.s32.totalorder %s2330_s23, 3 }
   0xc   : > { %s2420_s6 = scalar_select %p179_p7, %s2318_s20, %s181_s27  }
   0xd   : > { %p275_p10 = pnand %p2130_p6, %p274_p9 }
   0xe   : > { %p333_p11 = scmp.lt.s32.totalorder (!%p275_p10), %s2322_s21, 1  ;;  %v430_v0 = vlaneseq (!%p275_p10)  ;;  %vm2332_vm0 = vmmov (!%p275_p10), 0   ;;  %v2333_v1 = vmov (!%p275_p10), 0   ;;  %vm693_vm6 = vcmask (!%p275_p10), 1041408   ;;  %s2334_s15 = smov (!%p275_p10), 2  }
   0xf   : > { %278 = sbr.rel (%p275_p10) target bundleno = 458 (0x1ca), region = 40  ;;  %vm561_vm1 = vmpackc.low (!%p275_p10), %vm2332_vm0, %vm2332_vm0  ;;  %815 = vmatprep.mubr.bf16.mxu1 (!%p275_p10), %v2333_v1  ;;  %774 = vmatprep.mubr.bf16.mxu0 (!%p275_p10), %v2333_v1  ;;  %vm689_vm9 = vcmask (!%p275_p10), 31744   ;;  %v2506_v49 = vld [vmem:[%s2824_s3 + $0x4] sm:$0xf] (!%p275_p10)  ;;  %s2335_s29 = smov (!%p275_p10), 126   ;;  %vm1121_vm10 = vcmask (!%p275_p10), 15360  }
  0x10   : > { %v579_v2 = vshrl.u32 (!%p275_p10), %v430_v0, 7  ;;  %v431_v3 = vand.u32 (!%p275_p10), 127, %v430_v0  ;;  %2247 = vset.pattern.permute.xlu0 (!%p275_p10), %v2333_v1  ;;  %v570_v4 = vsel (!%p275_p10), %vm561_vm1, 65537, %v2333_v1  ;;  %vm1554_vm11 = vcmask (!%p275_p10), 1031168   ;;  %s326_s13 = sand.u32 (!%p275_p10), 1, %s2314_s19  }
  0x11   : > { %s2782_s16 = scalar_lea.sflag (!%p275_p10), [#allocation3], %s326_s13 }
  0x12   : > { %v584_v5 = vsub.s32 (!%p275_p10), 4, %v579_v2  ;;  %v580_v6 = vsub.s32 (!%p275_p10), 0, %v579_v2  ;;  %v432_v7 = vadd.s32 (!%p275_p10), 128, %v431_v3 }
  0x14   : > { %v2443_v9 = vrot.slane (!%p275_p10), %v570_v4, %v584_v5  ;;  %v2445_v10 = vrot.slane (!%p275_p10), %v570_v4, %v580_v6  ;;  %v453_v12 = vadd.s32 (!%p275_p10), 4294967168, %v432_v7 }
  0x16   : > { %s334_s7 = scalar_select %p333_p11, %s2322_s21, 1  ;;  %vm653_vm2 = vcmp.ne.s16.totalorder %v2443_v9, 0  ;;  %vm652_vm3 = vcmp.ne.s16.totalorder %v2445_v10, 0  ;;  %vm489_vm4 = vcmp.lt.s32.totalorder %v453_v12, 16  ;;  %v1966_v9 = vld [vmem:[%s2825_s4] sm:$0xff] }
  0x17   : > { %vm560_vm5 = vmpackc.low %vm489_vm4, %vm2332_vm0 }
  0x18   : > { %s2430_s8 = sshll.u32 %s334_s7, 2  ;;  %v569_v22 = vsel %vm560_vm5, 65537, %v2333_v1 }
  0x19   : > { %s2436_s11 = scalar_lea.vmem %s2822_s1, %s2430_s8  ;;  %s339_s14 = scalar_lea.vmem %s2821_s0, %s2430_s8  ;;  %v581_v26 = vrot.slane %v569_v22, %v580_v6  ;;  %v585_v27 = vrot.slane %v569_v22, %v584_v5 }
  0x1a   : > { %v380_v8 = vld [vmem:[%s2436_s11 + $0x8] sm:$0xff]  ;;  %v381_v11 = vld [vmem:[%s2436_s11 + $0x10] sm:$0xff]  ;;  %v378_v16 = vld [vmem:[%s339_s14] sm:$0xf]  ;;  %s367_s24 = scalar_lea.vmem %s2823_s2, %s2430_s8  ;;  %s2131_s14 = sshll.u32 %s326_s13, 7 }
  0x1b   : > { %v415_v13 = vpack.c.bf16 %v380_v8, %v380_v8  ;;  %v397_v14 = vcombine.high %v380_v8, %v380_v8  ;;  %v417_v15 = vpack.c.bf16 %v381_v11, %v381_v11  ;;  %v379_v17 = vld [vmem:[%s2436_s11] sm:$0xff]  ;;  %v412_v21 = vpack.c.bf16 %v378_v16, %v378_v16  ;;  %v382_v28 = vld [vmem:[%s2436_s11 + $0x18] sm:$0xff]  ;;  %v384_v39 = vld [vmem:[%s2436_s11 + $0x28] sm:$0xff] }
  0x1c   : > { %v396_v18 = vcombine.high %v379_v17, %v379_v17  ;;  %v398_v30 = vcombine.high %v381_v11, %v381_v11  ;;  %v399_v31 = vcombine.high %v382_v28, %v382_v28  ;;  %vm650_vm7 = vcmp.ne.s16.totalorder %v581_v26, 0  ;;  %v387_v34 = vld [vmem:[%s367_s24] sm:$0xf]  ;;  %v385_v58 = vld [vmem:[%s2436_s11 + $0x30] sm:$0xff]  ;;  %v386_v59 = vld [vmem:[%s2436_s11 + $0x38] sm:$0xff] }
  0x1d   : > { %v2453_v19 = vsel %vm653_vm2, %v415_v13, 0  ;;  %v416_v20 = vpack.c.bf16 %v397_v14, %v397_v14  ;;  %v2465_v25 = vsel %vm653_vm2, %v417_v15, 0  ;;  %v413_v32 = vpack.c.bf16 %v379_v17, %v379_v17  ;;  %v383_v37 = vld [vmem:[%s2436_s11 + $0x20] sm:$0xff] }
  0x1e   : > { %1093 = vrot.lane.b32.xlu1 %v2453_v19, %s2334_s15  ;;  %v414_v23 = vpack.c.bf16 %v396_v18, %v396_v18  ;;  %v668_v33 = vsel %vm650_vm7, %v412_v21, 0  ;;  %vm651_vm8 = vcmp.ne.s16.totalorder %v585_v27, 0  ;;  %v419_v35 = vpack.c.bf16 %v382_v28, %v382_v28  ;;  %v2616_v26 = vld [vmem:[%s2824_s3] sm:$0xf] }
  0x1f   : > { %v2461_v24 = vsel %vm652_vm3, %v416_v20, 0  ;;  %v418_v36 = vpack.c.bf16 %v398_v30, %v398_v30  ;;  %v420_v38 = vpack.c.bf16 %v399_v31, %v399_v31  ;;  %v2487_v40 = vsel %vm651_vm8, %v413_v32, 0 }
  0x20   : > { %1095 = vrot.lane.b32.xlu0 %v2461_v24, %s2334_s15  ;;  %v2476_v29 = vsel %vm652_vm3, %v414_v23, 0  ;;  %2138 = vmatprep.subr.msk.bf16.mxu1 %vm693_vm6, %v2461_v24  ;;  %v401_v41 = vcombine.high %v384_v39, %v384_v39  ;;  %v429_v42 = vpack.c.bf16 %v387_v34, %v387_v34  ;;  %v400_v43 = vcombine.high %v383_v37, %v383_v37 }
  0x21   : > { %2136 = vmatprep.subr.msk.bf16.mxu0 %vm693_vm6, %v2476_v29  ;;  %v701_v44 = vsel %vm693_vm6, %v2453_v19, 0  ;;  %v2495_v45 = vsel %vm653_vm2, %v419_v35, 0  ;;  %v421_v46 = vpack.c.bf16 %v383_v37, %v383_v37  ;;  %v695_v48 = vsel %vm693_vm6, %v2487_v40, 0 }
  0x22   : > { %1097 = vrot.lane.b32.xlu1 %v2465_v25, %s2334_s15  ;;  %v2499_v47 = vsel %vm653_vm2, %v429_v42, 0  ;;  %784 = vmatpush1.bf16.msra.mxu1 %v701_v44  ;;  %v2512_v50 = vsel %vm652_vm3, %v418_v36, 0  ;;  %v2516_v51 = vsel %vm652_vm3, %v420_v38, 0  ;;  %v713_v52 = vsel %vm693_vm6, %v2495_v45, 0 }
  0x23   : > { %743 = vmatpush1.bf16.msra.mxu0 %v695_v48  ;;  %v424_v53 = vpack.c.bf16 %v401_v41, %v401_v41  ;;  %2142 = vmatprep.subr.msk.bf16.mxu1 %vm693_vm6, %v2516_v51  ;;  %v707_v54 = vsel %vm693_vm6, %v2465_v25, 0  ;;  %v422_v55 = vpack.c.bf16 %v400_v43, %v400_v43  ;;  %v2532_v56 = vsel %vm653_vm2, %v421_v46, 0 }
  0x24   : > { %1087 = vrot.lane.b32.xlu0 %v668_v33, %s2334_s15  ;;  %2140 = vmatprep.subr.msk.bf16.mxu0 %vm693_vm6, %v2512_v50  ;;  %v423_v57 = vpack.c.bf16 %v384_v39, %v384_v39  ;;  %v403_v61 = vcombine.high %v386_v59, %v386_v59  ;;  %v402_v63 = vcombine.high %v385_v58, %v385_v58  ;;  %v719_v5 = vsel %vm693_vm6, %v2532_v56, 0 }
  0x25   : > { %2139 = vmatmul.mubr.msk.bf16.vlgmr.msra.gmra.mrb[0].mxu1 %vm689_vm9, %v2506_v49  ;;  %v680_v60 = vsel %vm652_vm3, %v424_v53, 0  ;;  %v678_v62 = vsel %vm652_vm3, %v422_v55, 0  ;;  %v425_v2 = vpack.c.bf16 %v385_v58, %v385_v58  ;;  %v427_v8 = vpack.c.bf16 %v386_v59, %v386_v59 }
  0x26   : > { %1091 = vrot.lane.b32.xlu1 %v2476_v29, %s2334_s15  ;;  %2137 = vmatmul.mubr.msk.bf16.vlgmr.msra.gmra.mrb[0].mxu0 %vm689_vm9, %v2506_v49  ;;  %v679_v0 = vsel %vm653_vm2, %v423_v57, 0  ;;  %v428_v4 = vpack.c.bf16 %v403_v61, %v403_v61  ;;  %v426_v6 = vpack.c.bf16 %v402_v63, %v402_v63 }
  0x27   : > { %866 = vmatpush1.bf16.msra.mxu1 %v713_v52  ;;  %825 = vmatpush1.bf16.msra.mxu0 %v707_v54  ;;  %v725_v3 = vsel %vm693_vm6, %v679_v0, 0  ;;  %v681_v7 = vsel %vm653_vm2, %v425_v2, 0  ;;  %v683_v13 = vsel %vm653_vm2, %v427_v8, 0 }
  0x28   : > { %1089 = vrot.lane.b32.xlu0 %v2487_v40, %s2334_s15  ;;  %897 = vmatprep.mubr.bf16.mxu1 %v2333_v1  ;;  %v684_v11 = vsel %vm652_vm3, %v428_v4, 0  ;;  %v682_v12 = vsel %vm652_vm3, %v426_v6, 0  ;;  %v737_v14 = vsel %vm693_vm6, %v683_v13, 0  ;;  %v731_v15 = vsel %vm693_vm6, %v681_v7, 0  ;;  %v2168_v6 = vld [vmem:[%s2824_s3 + $0x8] sm:$0xf] }
  0x29   : > { %856 = vmatprep.mubr.bf16.mxu0 %v2333_v1  ;;  %2146 = vmatprep.subr.msk.bf16.mxu1 %vm693_vm6, %v680_v60 }
  0x2a   : > { %1101 = vrot.lane.b32.xlu1 %v2495_v45, %s2334_s15  ;;  %2144 = vmatprep.subr.msk.bf16.mxu0 %vm693_vm6, %v678_v62 }
  0x2c   : > { %1099 = vrot.lane.b32.xlu0 %v2512_v50, %s2334_s15 }
  0x2d   : > { %2143 = vmatmul.mubr.msk.bf16.vlgmr.msra.gmra.mrb[4].mxu1 %vm689_vm9, %v2506_v49 }
  0x2e   : > { %1105 = vrot.lane.b32.xlu1 %v2532_v56, %s2334_s15  ;;  %2141 = vmatmul.mubr.msk.bf16.vlgmr.msra.gmra.mrb[4].mxu0 %vm689_vm9, %v2506_v49 }
  0x2f   : > { %948 = vmatpush1.bf16.msra.mxu1 %v725_v3  ;;  %907 = vmatpush1.bf16.msra.mxu0 %v719_v5 }
  0x30   : > { %1103 = vrot.lane.b32.xlu0 %v2516_v51, %s2334_s15  ;;  %979 = vmatprep.mubr.bf16.mxu1 %v2333_v1 }
  0x31   : > { %938 = vmatprep.mubr.bf16.mxu0 %v2333_v1  ;;  %2150 = vmatprep.subr.msk.bf16.mxu1 %vm693_vm6, %v684_v11 }
  0x32   : > { %1109 = vrot.lane.b32.xlu1 %v679_v0, %s2334_s15  ;;  %2148 = vmatprep.subr.msk.bf16.mxu0 %vm693_vm6, %v682_v12 }
  0x34   : > { %1107 = vrot.lane.b32.xlu0 %v678_v62, %s2334_s15 }
  0x35   : > { %2147 = vmatmul.mubr.msk.bf16.vlgmr.msra.gmra.mrb[8].mxu1 %vm689_vm9, %v2506_v49 }
  0x36   : > { %1113 = vrot.lane.b32.xlu1 %v681_v7, %s2334_s15  ;;  %2145 = vmatmul.mubr.msk.bf16.vlgmr.msra.gmra.mrb[8].mxu0 %vm689_vm9, %v2506_v49 }
  0x37   : > { %1030 = vmatpush1.bf16.msra.mxu1 %v737_v14  ;;  %989 = vmatpush1.bf16.msra.mxu0 %v731_v15 }
  0x38   : > { %1111 = vrot.lane.b32.xlu0 %v680_v60, %s2334_s15  ;;  %1061 = vmatprep.mubr.bf16.mxu1 %v2333_v1 }
  0x39   : > { %1020 = vmatprep.mubr.bf16.mxu0 %v2333_v1 }
  0x3a   : > { %1117 = vrot.lane.b32.xlu1 %v683_v13, %s2334_s15 }
  0x3c   : > { %1115 = vrot.lane.b32.xlu0 %v682_v12, %s2334_s15 }
  0x3d   : > { %2151 = vmatmul.mubr.msk.bf16.vlgmr.msra.gmra.mrb[12].mxu1 %vm689_vm9, %v2506_v49 }
  0x3e   : > { %1520 = vrot.lane.b32.xlu1 %v2487_v40, %s2335_s29  ;;  %2149 = vmatmul.mubr.msk.bf16.vlgmr.msra.gmra.mrb[12].mxu0 %vm689_vm9, %v2506_v49 }
  0x3f   : > { %1262 = vmatprep.mubr.bf16.mxu1 %v2333_v1  ;;  %1221 = vmatprep.mubr.bf16.mxu0 %v2333_v1 }
  0x40   : > { %1119 = vrot.lane.b32.xlu0 %v684_v11, %s2334_s15  ;;  %s2742_s15 = scalar_lea.vmem [#allocation2], %s2131_s14 }
  0x42   : > { %1524 = vrot.lane.b32.xlu1 %v2453_v19, %s2335_s29 }
  0x44   : > { %1522 = vrot.lane.b32.xlu0 %v2476_v29, %s2335_s29 }
  0x46   : > { %1528 = vrot.lane.b32.xlu1 %v2465_v25, %s2335_s29 }
  0x48   : > { %1526 = vrot.lane.b32.xlu0 %v2461_v24, %s2335_s29 }
  0x4a   : > { %1532 = vrot.lane.b32.xlu1 %v2495_v45, %s2335_s29 }
  0x4c   : > { %1530 = vrot.lane.b32.xlu0 %v2512_v50, %s2335_s29 }
  0x4e   : > { %1536 = vrot.lane.b32.xlu1 %v2532_v56, %s2335_s29 }
  0x50   : > { %1534 = vrot.lane.b32.xlu0 %v2516_v51, %s2335_s29 }
  0x52   : > { %1540 = vrot.lane.b32.xlu1 %v679_v0, %s2335_s29 }
  0x54   : > { %1538 = vrot.lane.b32.xlu0 %v678_v62, %s2335_s29 }
  0x56   : > { %1544 = vrot.lane.b32.xlu1 %v681_v7, %s2335_s29 }
  0x58   : > { %1542 = vrot.lane.b32.xlu0 %v680_v60, %s2335_s29 }
  0x5a   : > { %1548 = vrot.lane.b32.xlu1 %v683_v13, %s2335_s29 }
  0x5c   : > { %1546 = vrot.lane.b32.xlu0 %v682_v12, %s2335_s29 }
  0x5e   : > { %1552 = vrot.lane.b32.xlu1 %v2499_v47, %s2335_s29 }
  0x60   : > { %1550 = vrot.lane.b32.xlu0 %v684_v11, %s2335_s29 }
  0x64   : > { %1969 = vperm.xlu0 %2247, %v1966_v9  }
  0x90   : > { %v1094_v10 = vpop.permute.xlu1 %1093 }
  0x92   : > { %v1096_v16 = vpop.permute.xlu0 %1095 }
  0x93   : > { %v1125_v17 = vsel %vm1121_vm10, %v1094_v10, %v1096_v16 }
  0x94   : > { %v1098_v18 = vpop.permute.xlu1 %1097  ;;  %2154 = vmatprep.subr.msk.bf16.mxu1 %vm693_vm6, %v1125_v17 }
  0x95   : > { %v1126_v29 = vsel %vm1121_vm10, %v1096_v16, %v1098_v18 }
  0x96   : > { %v1088_v19 = vpop.permute.xlu0 %1087  ;;  %v1154_v32 = vsel %vm693_vm6, %v1126_v29, 0 }
  0x98   : > { %v1092_v20 = vpop.permute.xlu1 %1091 }
  0x99   : > { %v1124_v21 = vsel %vm1121_vm10, %v1092_v20, %v1094_v10 }
  0x9a   : > { %v1148_v22 = vsel %vm693_vm6, %v1124_v21, 0  ;;  %v1090_v23 = vpop.permute.xlu0 %1089 }
  0x9b   : > { %v1122_v24 = vsel %vm1121_vm10, %v1088_v19, %v1090_v23  ;;  %v1123_v25 = vsel %vm1121_vm10, %v1090_v23, %v1092_v20  ;;  %1231 = vmatpush1.bf16.msra.mxu1 %v1148_v22 }
  0x9c   : > { %v1142_v27 = vsel %vm693_vm6, %v1122_v24, 0  ;;  %2152 = vmatprep.subr.msk.bf16.mxu0 %vm693_vm6, %v1123_v25  ;;  %v1102_v28 = vpop.permute.xlu1 %1101 }
  0x9d   : > { %1190 = vmatpush1.bf16.msra.mxu0 %v1142_v27 }
  0x9e   : > { %2155 = vmatmul.mubr.msk.bf16.vlgmr.msra.gmra.mrb[16].mxu1 %vm689_vm9, %v2616_v26  ;;  %v1100_v30 = vpop.permute.xlu0 %1099 }
  0x9f   : > { %v1127_v31 = vsel %vm1121_vm10, %v1098_v18, %v1100_v30  ;;  %1344 = vmatprep.mubr.bf16.mxu1 %v2333_v1  ;;  %v1128_v34 = vsel %vm1121_vm10, %v1100_v30, %v1102_v28 }
  0xa0   : > { %2153 = vmatmul.mubr.msk.bf16.vlgmr.msra.gmra.mrb[16].mxu0 %vm689_vm9, %v2616_v26  ;;  %2156 = vmatprep.subr.msk.bf16.mxu0 %vm693_vm6, %v1127_v31  ;;  %v1106_v33 = vpop.permute.xlu1 %1105  ;;  %v1160_v37 = vsel %vm693_vm6, %v1128_v34, 0 }
  0xa1   : > { %1272 = vmatpush1.bf16.msra.mxu0 %v1154_v32  ;;  %1303 = vmatprep.mubr.bf16.mxu0 %v2333_v1 }
  0xa2   : > { %v1104_v35 = vpop.permute.xlu0 %1103 }
  0xa3   : > { %v1129_v36 = vsel %vm1121_vm10, %v1102_v28, %v1104_v35  ;;  %v1130_v39 = vsel %vm1121_vm10, %v1104_v35, %v1106_v33 }
  0xa4   : > { %2158 = vmatprep.subr.msk.bf16.mxu1 %vm693_vm6, %v1129_v36  ;;  %v1110_v38 = vpop.permute.xlu1 %1109  ;;  %v1166_v43 = vsel %vm693_vm6, %v1130_v39, 0 }
  0xa5   : > { %1313 = vmatpush1.bf16.msra.mxu1 %v1160_v37 }
  0xa6   : > { %v1108_v40 = vpop.permute.xlu0 %1107 }
  0xa7   : > { %v1131_v41 = vsel %vm1121_vm10, %v1106_v33, %v1108_v40  ;;  %v1132_v44 = vsel %vm1121_vm10, %v1108_v40, %v1110_v38 }
  0xa8   : > { %2157 = vmatmul.mubr.msk.bf16.vlgmr.msra.gmra.mrb[20].mxu0 %vm689_vm9, %v2616_v26  ;;  %2159 = vmatmul.mubr.msk.bf16.vlgmr.msra.gmra.mrb[20].mxu1 %vm689_vm9, %v2616_v26  ;;  %v1114_v42 = vpop.permute.xlu1 %1113  ;;  %v1172_v47 = vsel %vm693_vm6, %v1132_v44, 0 }
  0xa9   : > { %2160 = vmatprep.subr.msk.bf16.mxu0 %vm693_vm6, %v1131_v41  ;;  %1385 = vmatprep.mubr.bf16.mxu0 %v2333_v1 }
  0xaa   : > { %1354 = vmatpush1.bf16.msra.mxu0 %v1166_v43  ;;  %v1112_v45 = vpop.permute.xlu0 %1111  ;;  %1426 = vmatprep.mubr.bf16.mxu1 %v2333_v1 }
  0xab   : > { %v1133_v46 = vsel %vm1121_vm10, %v1110_v38, %v1112_v45  ;;  %v1134_v49 = vsel %vm1121_vm10, %v1112_v45, %v1114_v42 }
  0xac   : > { %2162 = vmatprep.subr.msk.bf16.mxu1 %vm693_vm6, %v1133_v46  ;;  %v1118_v48 = vpop.permute.xlu1 %1117  ;;  %v1178_v53 = vsel %vm693_vm6, %v1134_v49, 0 }
  0xad   : > { %1395 = vmatpush1.bf16.msra.mxu1 %v1172_v47 }
  0xae   : > { %v1116_v50 = vpop.permute.xlu0 %1115 }
  0xaf   : > { %v1135_v51 = vsel %vm1121_vm10, %v1114_v42, %v1116_v50  ;;  %v1136_v54 = vsel %vm1121_vm10, %v1116_v50, %v1118_v48 }
  0xb0   : > { %2161 = vmatmul.mubr.msk.bf16.vlgmr.msra.gmra.mrb[24].mxu0 %vm689_vm9, %v2616_v26  ;;  %2163 = vmatmul.mubr.msk.bf16.vlgmr.msra.gmra.mrb[24].mxu1 %vm689_vm9, %v2616_v26  ;;  %v1521_v52 = vpop.permute.xlu1 %1520  ;;  %v1184_v57 = vsel %vm693_vm6, %v1136_v54, 0 }
  0xb1   : > { %2164 = vmatprep.subr.msk.bf16.mxu0 %vm693_vm6, %v1135_v51  ;;  %1467 = vmatprep.mubr.bf16.mxu0 %v2333_v1 }
  0xb2   : > { %1436 = vmatpush1.bf16.msra.mxu0 %v1178_v53  ;;  %v1120_v55 = vpop.permute.xlu0 %1119  ;;  %1508 = vmatprep.mubr.bf16.mxu1 %v2333_v1 }
  0xb3   : > { %v1137_v56 = vsel %vm1121_vm10, %v1118_v48, %v1120_v55 }
  0xb4   : > { %2166 = vmatprep.subr.msk.bf16.mxu1 %vm693_vm6, %v1137_v56  ;;  %v1525_v58 = vpop.permute.xlu1 %1524 }
  0xb5   : > { %1477 = vmatpush1.bf16.msra.mxu1 %v1184_v57 }
  0xb6   : > { %v1523_v59 = vpop.permute.xlu0 %1522 }
  0xb7   : > { %v1555_v60 = vsel %vm1554_vm11, %v1521_v52, %v1523_v59  ;;  %v1556_v61 = vsel %vm1554_vm11, %v1523_v59, %v1525_v58 }
  0xb8   : > { %v1575_v62 = vsel %vm693_vm6, %v1555_v60, 0  ;;  %2165 = vmatmul.mubr.msk.bf16.vlgmr.msra.gmra.mrb[28].mxu0 %vm689_vm9, %v2616_v26  ;;  %2167 = vmatmul.mubr.msk.bf16.vlgmr.msra.gmra.mrb[28].mxu1 %vm689_vm9, %v2616_v26  ;;  %v1529_v63 = vpop.permute.xlu1 %1528 }
  0xb9   : > { %2169 = vmatprep.subr.msk.bf16.mxu0 %vm693_vm6, %v1556_v61  ;;  %1654 = vmatprep.mubr.bf16.mxu0 %v2333_v1 }
  0xba   : > { %1623 = vmatpush1.bf16.msra.mxu0 %v1575_v62  ;;  %v1527_v0 = vpop.permute.xlu0 %1526  ;;  %1695 = vmatprep.mubr.bf16.mxu1 %v2333_v1 }
  0xbb   : > { %v1557_v2 = vsel %vm1554_vm11, %v1525_v58, %v1527_v0  ;;  %v1558_v3 = vsel %vm1554_vm11, %v1527_v0, %v1529_v63 }
  0xbc   : > { %v1581_v4 = vsel %vm693_vm6, %v1557_v2, 0  ;;  %2171 = vmatprep.subr.msk.bf16.mxu1 %vm693_vm6, %v1558_v3  ;;  %v1533_v5 = vpop.permute.xlu1 %1532 }
  0xbd   : > { %1664 = vmatpush1.bf16.msra.mxu1 %v1581_v4 }
  0xbe   : > { %v1531_v7 = vpop.permute.xlu0 %1530 }
  0xbf   : > { %v1559_v8 = vsel %vm1554_vm11, %v1529_v63, %v1531_v7  ;;  %v1560_v11 = vsel %vm1554_vm11, %v1531_v7, %v1533_v5 }
  0xc0   : > { %v1587_v12 = vsel %vm693_vm6, %v1559_v8, 0  ;;  %2170 = vmatmul.mubr.msk.bf16.vlgmr.msra.gmra.mrb[32].mxu0 %vm689_vm9, %v2168_v6  ;;  %2172 = vmatmul.mubr.msk.bf16.vlgmr.msra.gmra.mrb[32].mxu1 %vm689_vm9, %v2168_v6  ;;  %v1537_v13 = vpop.permute.xlu1 %1536 }
  0xc1   : > { %2173 = vmatprep.subr.msk.bf16.mxu0 %vm693_vm6, %v1560_v11  ;;  %1736 = vmatprep.mubr.bf16.mxu0 %v2333_v1 }
  0xc2   : > { %1705 = vmatpush1.bf16.msra.mxu0 %v1587_v12  ;;  %v1535_v14 = vpop.permute.xlu0 %1534  ;;  %1777 = vmatprep.mubr.bf16.mxu1 %v2333_v1 }
  0xc3   : > { %v1561_v15 = vsel %vm1554_vm11, %v1533_v5, %v1535_v14  ;;  %v1562_v9 = vsel %vm1554_vm11, %v1535_v14, %v1537_v13 }
  0xc4   : > { %v1593_v10 = vsel %vm693_vm6, %v1561_v15, 0  ;;  %2175 = vmatprep.subr.msk.bf16.mxu1 %vm693_vm6, %v1562_v9  ;;  %v1541_v16 = vpop.permute.xlu1 %1540 }
  0xc5   : > { %1746 = vmatpush1.bf16.msra.mxu1 %v1593_v10 }
  0xc6   : > { %v1539_v17 = vpop.permute.xlu0 %1538 }
  0xc7   : > { %v1563_v18 = vsel %vm1554_vm11, %v1537_v13, %v1539_v17  ;;  %v1564_v19 = vsel %vm1554_vm11, %v1539_v17, %v1541_v16 }
  0xc8   : > { %v1599_v20 = vsel %vm693_vm6, %v1563_v18, 0  ;;  %2174 = vmatmul.mubr.msk.bf16.vlgmr.msra.gmra.mrb[36].mxu0 %vm689_vm9, %v2168_v6  ;;  %2176 = vmatmul.mubr.msk.bf16.vlgmr.msra.gmra.mrb[36].mxu1 %vm689_vm9, %v2168_v6  ;;  %v1545_v21 = vpop.permute.xlu1 %1544 }
  0xc9   : > { %2177 = vmatprep.subr.msk.bf16.mxu0 %vm693_vm6, %v1564_v19  ;;  %1818 = vmatprep.mubr.bf16.mxu0 %v2333_v1 }
  0xca   : > { %1787 = vmatpush1.bf16.msra.mxu0 %v1599_v20  ;;  %v1543_v22 = vpop.permute.xlu0 %1542  ;;  %1859 = vmatprep.mubr.bf16.mxu1 %v2333_v1 }
  0xcb   : > { %v1565_v23 = vsel %vm1554_vm11, %v1541_v16, %v1543_v22  ;;  %v1566_v24 = vsel %vm1554_vm11, %v1543_v22, %v1545_v21 }
  0xcc   : > { %v1605_v25 = vsel %vm693_vm6, %v1565_v23, 0  ;;  %2179 = vmatprep.subr.msk.bf16.mxu1 %vm693_vm6, %v1566_v24  ;;  %v1549_v26 = vpop.permute.xlu1 %1548 }
  0xcd   : > { %1828 = vmatpush1.bf16.msra.mxu1 %v1605_v25 }
  0xce   : > { %v1547_v27 = vpop.permute.xlu0 %1546 }
  0xcf   : > { %v1567_v28 = vsel %vm1554_vm11, %v1545_v21, %v1547_v27  ;;  %v1568_v29 = vsel %vm1554_vm11, %v1547_v27, %v1549_v26 }
  0xd0   : > { %v1611_v30 = vsel %vm693_vm6, %v1567_v28, 0  ;;  %2178 = vmatmul.mubr.msk.bf16.vlgmr.msra.gmra.mrb[40].mxu0 %vm689_vm9, %v2168_v6  ;;  %2180 = vmatmul.mubr.msk.bf16.vlgmr.msra.gmra.mrb[40].mxu1 %vm689_vm9, %v2168_v6  ;;  %v1553_v31 = vpop.permute.xlu1 %1552 }
  0xd1   : > { %2181 = vmatprep.subr.msk.bf16.mxu0 %vm693_vm6, %v1568_v29  ;;  %1900 = vmatprep.mubr.bf16.mxu0 %v2333_v1 }
  0xd2   : > { %1869 = vmatpush1.bf16.msra.mxu0 %v1611_v30  ;;  %v1551_v32 = vpop.permute.xlu0 %1550  ;;  %1941 = vmatprep.mubr.bf16.mxu1 %v2333_v1 }
  0xd3   : > { %v1569_v33 = vsel %vm1554_vm11, %v1549_v26, %v1551_v32  ;;  %v1570_v34 = vsel %vm1554_vm11, %v1551_v32, %v1553_v31 }
  0xd4   : > { %v1617_v35 = vsel %vm693_vm6, %v1569_v33, 0  ;;  %2183 = vmatprep.subr.msk.bf16.mxu1 %vm693_vm6, %v1570_v34 }
  0xd5   : > { %1910 = vmatpush1.bf16.msra.mxu1 %v1617_v35 }
  0xd8   : > { %2182 = vmatmul.mubr.msk.bf16.vlgmr.msra.gmra.mrb[44].mxu0 %vm689_vm9, %v2168_v6  ;;  %2184 = vmatmul.mubr.msk.bf16.vlgmr.msra.gmra.mrb[44].mxu1 %vm689_vm9, %v2168_v6 }
  0xf8   : > { %v817_v36 = vpop.f32.mrb[0].mxu1 }
  0xf9   : > { %v776_v37 = vpop.f32.mrb[0].mxu0  ;;  %v819_v38 = vpop.f32.mrb[1].mxu1 }
  0xfa   : > { %v778_v39 = vpop.f32.mrb[1].mxu0  ;;  %v821_v40 = vpop.f32.mrb[2].mxu1 }
  0xfb   : > { %v780_v41 = vpop.f32.mrb[2].mxu0  ;;  %v822_v1 = vpop.f32.mrb[3].mxu1 }
  0xfc   : > { %v781_v42 = vpop.f32.mrb[3].mxu0 }
 0x100   : > { %v899_v43 = vpop.f32.mrb[4].mxu1 }
 0x101   : > { %v858_v44 = vpop.f32.mrb[4].mxu0  ;;  %v901_v45 = vpop.f32.mrb[5].mxu1 }
 0x102   : > { %v860_v46 = vpop.f32.mrb[5].mxu0  ;;  %v903_v47 = vpop.f32.mrb[6].mxu1 }
 0x103   : > { %v862_v48 = vpop.f32.mrb[6].mxu0  ;;  %v904_v49 = vpop.f32.mrb[7].mxu1 }
 0x104   : > { %v863_v50 = vpop.f32.mrb[7].mxu0 }
 0x108   : > { %v981_v51 = vpop.f32.mrb[8].mxu1 }
 0x109   : > { %v940_v52 = vpop.f32.mrb[8].mxu0  ;;  %v983_v53 = vpop.f32.mrb[9].mxu1 }
 0x10a   : > { %v942_v54 = vpop.f32.mrb[9].mxu0  ;;  %v985_v55 = vpop.f32.mrb[10].mxu1 }
 0x10b   : > { %v944_v56 = vpop.f32.mrb[10].mxu0  ;;  %v986_v57 = vpop.f32.mrb[11].mxu1 }
 0x10c   : > { %v945_v58 = vpop.f32.mrb[11].mxu0 }
 0x110   : > { %v1063_v59 = vpop.f32.mrb[12].mxu1 }
 0x111   : > { %v1022_v60 = vpop.f32.mrb[12].mxu0  ;;  %v1065_v61 = vpop.f32.mrb[13].mxu1 }
 0x112   : > { %v1024_v62 = vpop.f32.mrb[13].mxu0  ;;  %v1067_v63 = vpop.f32.mrb[14].mxu1 }
 0x113   : > { %v1026_v0 = vpop.f32.mrb[14].mxu0  ;;  %v1068_v2 = vpop.f32.mrb[15].mxu1 }
 0x114   : > { %v1027_v3 = vpop.f32.mrb[15].mxu0 }
 0x171   : > { %v1264_v4 = vpop.f32.mrb[16].mxu1 }
 0x172   : > { %v1265_v5 = vadd.f32 %v1264_v4, %v817_v36  ;;  %v1266_v6 = vpop.f32.mrb[17].mxu1 }
 0x173   : > { %v1267_v7 = vadd.f32 %v1266_v6, %v819_v38  ;;  %v1223_v8 = vpop.f32.mrb[16].mxu0  ;;  %v1268_v11 = vpop.f32.mrb[18].mxu1 }
 0x174   : > { %v1224_v12 = vadd.f32 %v1223_v8, %v776_v37  ;;  %v1225_v13 = vpop.f32.mrb[17].mxu0  ;;  %v1269_v14 = vpop.f32.mrb[19].mxu1 }
 0x175   : > { %v1226_v15 = vadd.f32 %v1225_v13, %v778_v39  ;;  %v1227_v9 = vpop.f32.mrb[18].mxu0 }
 0x176   : > { %v1228_v10 = vpop.f32.mrb[19].mxu0 }
 0x17b   : > { %v1305_v16 = vpop.f32.mrb[20].mxu0  ;;  %v1346_v17 = vpop.f32.mrb[20].mxu1 }
 0x17c   : > { %v1306_v18 = vadd.f32 %v1305_v16, %v858_v44  ;;  %v1347_v19 = vadd.f32 %v1346_v17, %v899_v43  ;;  %v1307_v20 = vpop.f32.mrb[21].mxu0  ;;  %v1348_v21 = vpop.f32.mrb[21].mxu1 }
 0x17d   : > { %v1308_v22 = vadd.f32 %v1307_v20, %v860_v46  ;;  %v1349_v23 = vadd.f32 %v1348_v21, %v901_v45  ;;  %v1309_v24 = vpop.f32.mrb[22].mxu0  ;;  %v1350_v25 = vpop.f32.mrb[22].mxu1 }
 0x17e   : > { %v1310_v26 = vpop.f32.mrb[23].mxu0  ;;  %v1351_v27 = vpop.f32.mrb[23].mxu1 }
 0x183   : > { %v1387_v28 = vpop.f32.mrb[24].mxu0  ;;  %v1428_v29 = vpop.f32.mrb[24].mxu1 }
 0x184   : > { %v2718_v30 = vadd.f32 %v1387_v28, %v940_v52  ;;  %v2720_v31 = vadd.f32 %v1428_v29, %v981_v51  ;;  %v1389_v32 = vpop.f32.mrb[25].mxu0  ;;  %v1430_v33 = vpop.f32.mrb[25].mxu1 }
 0x185   : > { %v2722_v34 = vadd.f32 %v1389_v32, %v942_v54  ;;  %v2724_v35 = vadd.f32 %v1430_v33, %v983_v53  ;;  %v1391_v36 = vpop.f32.mrb[26].mxu0  ;;  %v1432_v37 = vpop.f32.mrb[26].mxu1 }
 0x186   : > { %v1392_v38 = vpop.f32.mrb[27].mxu0  ;;  %v1433_v39 = vpop.f32.mrb[27].mxu1 }
 0x187   : > { %v2734_v51 = vpop.permute.xlu0 %1969 }
 0x18b   : > { %v1469_v40 = vpop.f32.mrb[28].mxu0  ;;  %v1510_v41 = vpop.f32.mrb[28].mxu1 }
 0x18c   : > { %v2726_v1 = vadd.f32 %v1469_v40, %v1022_v60  ;;  %v2728_v42 = vadd.f32 %v1510_v41, %v1063_v59  ;;  %v1471_v43 = vpop.f32.mrb[29].mxu0  ;;  %v1512_v44 = vpop.f32.mrb[29].mxu1 }
 0x18d   : > { %v2730_v45 = vadd.f32 %v1471_v43, %v1024_v62  ;;  %v2732_v46 = vadd.f32 %v1512_v44, %v1065_v61  ;;  %v1473_v47 = vpop.f32.mrb[30].mxu0  ;;  %v1514_v48 = vpop.f32.mrb[30].mxu1 }
 0x18e   : > { %v1474_v49 = vpop.f32.mrb[31].mxu0  ;;  %v1515_v50 = vpop.f32.mrb[31].mxu1 }
 0x193   : > { %v1656_v52 = vpop.f32.mrb[32].mxu0  ;;  %v1697_v53 = vpop.f32.mrb[32].mxu1 }
 0x194   : > { %v1950_v54 = vadd.f32 %v1656_v52, %v1224_v12  ;;  %v1952_v55 = vadd.f32 %v1697_v53, %v1265_v5  ;;  %v1658_v56 = vpop.f32.mrb[33].mxu0  ;;  %v1699_v57 = vpop.f32.mrb[33].mxu1 }
 0x195   : > { %v1951_v58 = vadd.f32 %v1658_v56, %v1226_v15  ;;  %v1953_v59 = vadd.f32 %v1699_v57, %v1267_v7  ;;  %v1660_v60 = vpop.f32.mrb[34].mxu0  ;;  %v1701_v62 = vpop.f32.mrb[34].mxu1 }
 0x196   : > { %v1972_v61 = vadd.f32 %v2734_v51, %v1950_v54  ;;  %v1974_v63 = vadd.f32 %v2734_v51, %v1952_v55  ;;  %v1661_v0 = vpop.f32.mrb[35].mxu0  ;;  %v1702_v2 = vpop.f32.mrb[35].mxu1 }
 0x197   : > { %v1973_v3 = vadd.f32 %v2734_v51, %v1951_v58  ;;  %v1975_v4 = vadd.f32 %v2734_v51, %v1953_v59 }
 0x198   : > { %1988 = vst [vmem:[%s2742_s15] sm:$0xff] %v1972_v61  ;;  %1990 = vst [vmem:[%s2742_s15 + $0x10] sm:$0xff] %v1974_v63 }
 0x199   : > { %1989 = vst [vmem:[%s2742_s15 + $0x8] sm:$0xff] %v1973_v3  ;;  %1991 = vst [vmem:[%s2742_s15 + $0x18] sm:$0xff] %v1975_v4 }
 0x19b   : > { %v1738_v5 = vpop.f32.mrb[36].mxu0  ;;  %v1779_v6 = vpop.f32.mrb[36].mxu1 }
 0x19c   : > { %v1954_v7 = vadd.f32 %v1738_v5, %v1306_v18  ;;  %v1956_v8 = vadd.f32 %v1779_v6, %v1347_v19  ;;  %v1740_v11 = vpop.f32.mrb[37].mxu0  ;;  %v1781_v12 = vpop.f32.mrb[37].mxu1 }
 0x19d   : > { %v1955_v13 = vadd.f32 %v1740_v11, %v1308_v22  ;;  %v1957_v14 = vadd.f32 %v1781_v12, %v1349_v23  ;;  %v1742_v15 = vpop.f32.mrb[38].mxu0  ;;  %v1783_v9 = vpop.f32.mrb[38].mxu1 }
 0x19e   : > { %v1976_v10 = vadd.f32 %v2734_v51, %v1954_v7  ;;  %v1978_v16 = vadd.f32 %v2734_v51, %v1956_v8  ;;  %v1743_v17 = vpop.f32.mrb[39].mxu0  ;;  %v1784_v20 = vpop.f32.mrb[39].mxu1 }
 0x19f   : > { %v1977_v21 = vadd.f32 %v2734_v51, %v1955_v13  ;;  %v1979_v24 = vadd.f32 %v2734_v51, %v1957_v14 }
 0x1a0   : > { %1992 = vst [vmem:[%s2742_s15 + $0x20] sm:$0xff] %v1976_v10  ;;  %1994 = vst [vmem:[%s2742_s15 + $0x30] sm:$0xff] %v1978_v16 }
 0x1a1   : > { %1993 = vst [vmem:[%s2742_s15 + $0x28] sm:$0xff] %v1977_v21  ;;  %1995 = vst [vmem:[%s2742_s15 + $0x38] sm:$0xff] %v1979_v24 }
 0x1a3   : > { %v1820_v18 = vpop.f32.mrb[40].mxu0  ;;  %v1861_v19 = vpop.f32.mrb[40].mxu1 }
 0x1a4   : > { %v1958_v22 = vadd.f32 %v1820_v18, %v2718_v30  ;;  %v1960_v23 = vadd.f32 %v1861_v19, %v2720_v31  ;;  %v1822_v25 = vpop.f32.mrb[41].mxu0  ;;  %v1863_v26 = vpop.f32.mrb[41].mxu1 }
 0x1a5   : > { %v1959_v27 = vadd.f32 %v1822_v25, %v2722_v34  ;;  %v1961_v28 = vadd.f32 %v1863_v26, %v2724_v35  ;;  %v1824_v29 = vpop.f32.mrb[42].mxu0  ;;  %v1865_v32 = vpop.f32.mrb[42].mxu1 }
 0x1a6   : > { %v1980_v33 = vadd.f32 %v2734_v51, %v1958_v22  ;;  %v1982_v36 = vadd.f32 %v2734_v51, %v1960_v23  ;;  %v1825_v37 = vpop.f32.mrb[43].mxu0  ;;  %v1866_v38 = vpop.f32.mrb[43].mxu1 }
 0x1a7   : > { %v1981_v30 = vadd.f32 %v2734_v51, %v1959_v27  ;;  %v1983_v39 = vadd.f32 %v2734_v51, %v1961_v28 }
 0x1a8   : > { %1996 = vst [vmem:[%s2742_s15 + $0x40] sm:$0xff] %v1980_v33  ;;  %1998 = vst [vmem:[%s2742_s15 + $0x50] sm:$0xff] %v1982_v36 }
 0x1a9   : > { %1997 = vst [vmem:[%s2742_s15 + $0x48] sm:$0xff] %v1981_v30  ;;  %1999 = vst [vmem:[%s2742_s15 + $0x58] sm:$0xff] %v1983_v39 }
 0x1ab   : > { %v1902_v31 = vpop.f32.mrb[44].mxu0  ;;  %v1943_v34 = vpop.f32.mrb[44].mxu1  ;;  %2011 = sbr.rel (!%p2407_p4) target bundleno = 458 (0x1ca), region = 44 }
 0x1ac   : > { %v1962_v35 = vadd.f32 %v1902_v31, %v2726_v1  ;;  %v1964_v40 = vadd.f32 %v1943_v34, %v2728_v42  ;;  %v1904_v41 = vpop.f32.mrb[45].mxu0  ;;  %v1945_v43 = vpop.f32.mrb[45].mxu1 }
 0x1ad   : > { %v1963_v44 = vadd.f32 %v1904_v41, %v2730_v45  ;;  %v1965_v47 = vadd.f32 %v1945_v43, %v2732_v46  ;;  %v1906_v48 = vpop.f32.mrb[46].mxu0  ;;  %v1947_v49 = vpop.f32.mrb[46].mxu1 }
 0x1ae   : > { %v1984_v50 = vadd.f32 %v2734_v51, %v1962_v35  ;;  %v1986_v52 = vadd.f32 %v2734_v51, %v1964_v40  ;;  %v1907_v53 = vpop.f32.mrb[47].mxu0  ;;  %v1948_v54 = vpop.f32.mrb[47].mxu1 }
 0x1af   : > { %v1985_v1 = vadd.f32 %v2734_v51, %v1963_v44  ;;  %v1987_v42 = vadd.f32 %v2734_v51, %v1965_v47 }
 0x1b0   : > { %2000 = vst [vmem:[%s2742_s15 + $0x60] sm:$0xff] %v1984_v50  ;;  %2002 = vst [vmem:[%s2742_s15 + $0x70] sm:$0xff] %v1986_v52 }
 0x1b1   : > { %2001 = vst [vmem:[%s2742_s15 + $0x68] sm:$0xff] %v1985_v1  ;;  %2003 = vst [vmem:[%s2742_s15 + $0x78] sm:$0xff] %v1987_v42 }
 0x1b2   : > { %2017 = vsyncadd %s2782_s16, 1920  ;;  %s2186_s17 = sshll.u32 %s2322_s21, 7  ;;  %s2024_s24 = sshll.u32 %s2742_s15, 4  ;;  %s2025_s24 = int_to_ptr.vmem [resolvable:$true] %s2024_s24 }
 0x1b3   : > { %s2021_s29 = scalar_lea.hbm %s2826_s5, %s2186_s17  ;;  %s2256_s7 = scalar_lea.vmem %s2025_s24, 128 }
 0x1b4   : > { %p2257_p12 = scmp.ne.s32.totalorder %s2025_s24, %s2256_s7  ;;  %s2336_s8 = smov [#allocation2]  }
 0x1b5   : > { %s2258_s9 = sshll.u32 %s2336_s8, 4  ;;  %s2259_s9 = int_to_ptr.vmem [resolvable:$false] %s2258_s9 }
 0x1b6   : > { %s2260_s10 = scalar_lea.vmem %s2259_s9, 4096  ;;  %p2261_p13 = scmp.lt.s32.totalorder %s2025_s24, %s2259_s9 }
 0x1b7   : > { %p2262_p0 = scmp.lt.s32.totalorder %s2260_s10, %s2256_s7 }
 0x1b9   : > { %p2263_p1 = por %p2262_p0, %p2261_p13 }
 0x1bb   : > { %p2264_p2 = pnand %p2263_p1, %p2257_p12 }
 0x1bd   : > { %2267 = shalt.err (!%p2264_p2)
}
 0x1be   : > { %s2268_s28 = scalar_lea.hbm %s2021_s29, 128  ;;  %s2270_s12 = scalar_lea.hbm %s2826_s5, 256 }
 0x1bf   : > { %p2269_p3 = scmp.ne.s32.totalorder %s2021_s29, %s2268_s28  ;;  %p2271_p4 = scmp.lt.u32.totalorder %s2021_s29, %s2826_s5 }
 0x1c0   : > { %p2272_p5 = scmp.lt.u32.totalorder %s2270_s12, %s2268_s28  ;;  %p2274_p7 = scmp.lt.u32.totalorder %s2268_s28, %s2021_s29 }
 0x1c2   : > { %p2273_p6 = por %p2272_p5, %p2271_p4 }
 0x1c4   : > { %p2275_p9 = por %p2274_p7, %p2273_p6 }
 0x1c6   : > { %p2276_p10 = pnand %p2275_p9, %p2269_p3 }
 0x1c8   : > { %2279 = shalt.err (!%p2276_p10)
}
 0x1c9   : > { %2027 = dma.vmem_to_hbm [thread:$0]  %s2025_s24, 128, %s2021_s29, %s2782_s16  }
 0x1ca PF: > { %p2194_p11 = scmp.ge.s32.totalorder %s2330_s23, 2  ;;  %s2036_s15 = sand.u32 1, %s2310_s18  }
 0x1cb   : > { %s2037_s17 = scalar_lea.sflag [#allocation3], %s2036_s15 }
 0x1cc   : > { %p2191_p12 = pnand %p2194_p11, %p2414_p8 }
 0x1ce   : > { %2305 = dma.done.wait (!%p2191_p12), %s2037_s17, 2048  }
 0x1cf   : > { %2307 = vsyncadd (!%p2191_p12), %s2037_s17, 4294965248  ;;  %s18_s23 = sadd.s32 1, %s2330_s23   ;;  %s2829_s18 = smov %s2314_s19 }
 0x1d0   : > { %p15_p13 = scmp.ge.s32.totalorder %s18_s23, 4   ;;  %s2830_s19 = smov %s2318_s20 }
 0x1d1   : > { %s2831_s20 = smov %s2420_s6  ;;  %s2832_s21 = smov %s2326_s22 }
 0x1d2   : > { %s2833_s22 = smov %s2835_s26  ;;  %17 = sbr.rel (!%p15_p13) target bundleno = 4 (0x4), region = 83 }
 0x1d9   :  { %2042 = vsyncpa [#allocation3], 1 }
 0x1da   :  { %2044 = vsyncpa [#allocation3 + $0x1], 1 }

</bundles_post_ra>
